<compile_context>
chip_gen: v7x
topology: tpu7x:2x2x1
jax: 0.10.0
libtpu: 0.0.40
codegen_flags: <defaults>
</compile_context>

<pallas_src>
import functools

import jax
import jax.numpy as jnp
from jax.experimental import pallas as pl
from jax.experimental.pallas import tpu as pltpu


def _explore_popular_kernel(am_ref, lm_ref, u_ref, w_ref, vw_ref,
                            e1_ref, e2_ref, mb_ref, out_ref, ctx_sc):
    # am_ref : (TB, S, H) f32   all_memory (batch block)
    # lm_ref : (TB, H)    f32   last_memory (batch block)
    # u_ref  : (H, H)     bf16  U_popular.weight.T
    # w_ref  : (H, H)     bf16  W_popular.weight.T
    # vw_ref : (1, H)     f32   V_popular.weight (row vector, used on VPU)
    # e1_ref : (H, TN)    bf16  Explore_popular.weight[:, :H].T   (N tile)
    # e2_ref : (H, TN)    bf16  Explore_popular.weight[:, H:].T   (N tile)
    # mb_ref : (TB, TN)   f32   additive candidate-mask bias (0 or -1e30)
    # out_ref: (TB, TN)   f32
    # ctx_sc : (TB, H)    f32   attention context, persists across N tiles
    tb, s, h = am_ref.shape

    # Attention / context only needs to be computed once per batch block.
    @pl.when(pl.program_id(1) == 0)
    def _():
        am = am_ref[...]                                   # (TB, S, H) f32
        lm = lm_ref[...]                                   # (TB, H)    f32

        # U_popular(all_memory), W_popular(last_memory)  (dropout = identity)
        am_proj = jnp.dot(am.reshape(tb * s, h).astype(jnp.bfloat16),
                          u_ref[...],
                          preferred_element_type=jnp.float32)       # (TB*S, H)
        lm_proj = jnp.dot(lm.astype(jnp.bfloat16), w_ref[...],
                          preferred_element_type=jnp.float32)       # (TB, H)

        # tanh(all + broadcast(last))
        hid = jnp.tanh(am_proj.reshape(tb, s, h) + lm_proj[:, None, :])

        # V_popular on the VPU: broadcast multiply + lane reduce.
        # (The V bias is a constant shift that cancels in the softmax.)
        scores = jnp.sum(hid * vw_ref[...], axis=-1, keepdims=True)  # (TB, S, 1)

        # softmax over the sequence axis (dim=1 in the torch code)
        m = jnp.max(scores, axis=1, keepdims=True)
        e = jnp.exp(scores - m)
        alpha = e / jnp.sum(e, axis=1, keepdims=True)                 # (TB, S, 1)

        # attention-weighted sum of the ORIGINAL all_memory values
        ctx_sc[...] = jnp.sum(am * alpha, axis=1)                     # (TB, H)

    # Decoder: Explore_popular(cat([ctx, last_memory_values])) on this N tile.
    ctx = ctx_sc[...].astype(jnp.bfloat16)                            # (TB, H)
    lm = lm_ref[...].astype(jnp.bfloat16)                             # (TB, H)
    logits = (jnp.dot(ctx, e1_ref[...], preferred_element_type=jnp.float32) +
              jnp.dot(lm,  e2_ref[...], preferred_element_type=jnp.float32))

    # additive candidate mask (-1e30 for non-candidates) then sigmoid
    out_ref[...] = jax.nn.sigmoid(logits + mb_ref[...]).astype(out_ref.dtype)


def explore_popular_forward(all_memory, last_memory, cand_mask_bias, params,
                            *, tb=128, tn=2048):
    """all_memory: (B,S,H) f32, last_memory: (B,H) f32,
    cand_mask_bias: (B,N) f32 additive bias (0 = candidate, -1e30 = not)."""
    B, S, H = all_memory.shape
    N = cand_mask_bias.shape[1]
    u_t, w_t, v_w, _v_b, e1, e2 = params   # V bias cancels in the softmax

    # bf16 MXU operands; elementwise math stays f32 inside the kernel.
    u_t = u_t.astype(jnp.bfloat16)
    w_t = w_t.astype(jnp.bfloat16)
    e1 = e1.astype(jnp.bfloat16)
    e2 = e2.astype(jnp.bfloat16)

    # --- tile sizing + padding ---------------------------------------------
    tb = max(1, min(tb, B))
    b_pad = pl.cdiv(B, tb) * tb

    n128 = pl.cdiv(N, 128) * 128
    tn = max(128, (min(tn, n128) // 128) * 128)
    n_pad = pl.cdiv(N, tn) * tn

    if b_pad != B:
        db = b_pad - B
        all_memory = jnp.pad(all_memory, ((0, db), (0, 0), (0, 0)))
        last_memory = jnp.pad(last_memory, ((0, db), (0, 0)))
        cand_mask_bias = jnp.pad(cand_mask_bias, ((0, db), (0, 0)))
    if n_pad != N:
        dn = n_pad - N
        e1 = jnp.pad(e1, ((0, 0), (0, dn)))
        e2 = jnp.pad(e2, ((0, 0), (0, dn)))
        cand_mask_bias = jnp.pad(cand_mask_bias, ((0, 0), (0, dn)),
                                 constant_values=-1e30)

    grid = (b_pad // tb, n_pad // tn)

    # rough VMEM budget (double-buffered pipelined tiles + weights + scratch)
    est = (2 * (tb * S * H * 4 + tb * H * 4 + tb * tn * 4 + 2 * H * tn * 2)
           + 2 * tb * tn * 4          # output tiles
           + 2 * H * H * 2 + H * 4    # U^T, W^T, V row
           + tb * H * 4)              # ctx scratch
    vmem_limit = int(min(2 * est + (4 << 20), 64 << 20))

    out = pl.pallas_call(
        _explore_popular_kernel,
        out_shape=jax.ShapeDtypeStruct((b_pad, n_pad), jnp.float32),
        grid_spec=pltpu.PrefetchScalarGridSpec(
            num_scalar_prefetch=0,
            grid=grid,
            in_specs=[
                pl.BlockSpec((tb, S, H), lambda b, n: (b, 0, 0)),  # all_memory
                pl.BlockSpec((tb, H),    lambda b, n: (b, 0)),     # last_memory
                pl.BlockSpec((H, H),     lambda b, n: (0, 0)),     # U^T (bf16)
                pl.BlockSpec((H, H),     lambda b, n: (0, 0)),     # W^T (bf16)
                pl.BlockSpec((1, H),     lambda b, n: (0, 0)),     # V row (f32)
                pl.BlockSpec((H, tn),    lambda b, n: (0, n)),     # E top half
                pl.BlockSpec((H, tn),    lambda b, n: (0, n)),     # E bottom half
                pl.BlockSpec((tb, tn),   lambda b, n: (b, n)),     # mask bias
            ],
            out_specs=pl.BlockSpec((tb, tn), lambda b, n: (b, n)),
            scratch_shapes=[pltpu.VMEM((tb, H), jnp.float32)],
        ),
        compiler_params=pltpu.CompilerParams(
            dimension_semantics=("parallel", "arbitrary"),
            vmem_limit_bytes=vmem_limit),
    )(all_memory, last_memory, u_t, w_t, v_w, e1, e2, cand_mask_bias)

    return out[:B, :N]


def make_params(key, hidden_size, num_item):
    """Deterministic synthetic parameters matching the torch module's shapes."""
    H, N = hidden_size, num_item
    k = jax.random.split(key, 5)
    # torch Linear stores weight as (out, in); pre-transpose so kernel does x @ W.
    U_w = jax.random.normal(k[0], (H, H), jnp.float32) * 0.1      # U_popular.weight
    W_w = jax.random.normal(k[1], (H, H), jnp.float32) * 0.1      # W_popular.weight
    V_w = jax.random.normal(k[2], (1, H), jnp.float32) * 0.1      # V_popular.weight
    V_b = jax.random.normal(k[3], (1,), jnp.float32) * 0.1        # V_popular.bias
    E_w = jax.random.normal(k[4], (N, 2 * H), jnp.float32) * 0.1  # Explore_popular.weight
    u_t = U_w.T                    # (H, H)
    w_t = W_w.T                    # (H, H)
    v_w = V_w                      # (1, H)  used as a row vector on the VPU
    v_b = V_b.reshape(1, 1)        # (1, 1)  mathematically cancels in softmax
    e1 = E_w[:, :H].T              # (H, N)  acts on ctx
    e2 = E_w[:, H:].T              # (H, N)  acts on last_memory_values
    return (u_t, w_t, v_w, v_b, e1, e2)


def make_candidate_mask_bias(item_seq, num_item):
    """Additive version of get_candidate_mask: 0.0 at candidate indices,
    -1e30 everywhere else (non-candidates are masked out before sigmoid)."""
    B = len(item_seq)
    bias = jnp.full((B, num_item), -1e30, jnp.float32)
    for b in range(B):
        bias = bias.at[b, jnp.asarray(item_seq[b])].set(0.0)
    return bias


if __name__ == "__main__":
    # Small shapes consistent with the module's forward.
    B, S, H, N = 2, 8, 32, 128      # batch, seq_len, hidden_size, num_item

    key = jax.random.PRNGKey(0)
    k_am, k_lm, k_par = jax.random.split(key, 3)

    all_memory = jax.random.normal(k_am, (B, S, H), jnp.float32)
    last_memory = jax.random.normal(k_lm, (B, H), jnp.float32)
    item_seq = [[3, 17, 42, 99, 120], [0, 7, 64, 88, 127]]   # candidate item ids

    params = make_params(k_par, H, N)
    cand_mask_bias = make_candidate_mask_bias(item_seq, N)

    out = explore_popular_forward(all_memory, last_memory, cand_mask_bias, params)
    out = jax.block_until_ready(out)

    assert out.shape == (B, N) and out.dtype == jnp.float32
    print("KERNEL_OK")
</pallas_src>

<mosaic_0001>
module attributes {stable_mosaic.version = 11 : i64} {
  func.func @_explore_popular_kernel(%arg0: i32, %arg1: i32, %arg2: memref<2x8x32xf32, #tpu.memory_space<vmem>>, %arg3: memref<2x32xf32, #tpu.memory_space<vmem>>, %arg4: memref<32x32xbf16, #tpu.memory_space<vmem>>, %arg5: memref<32x32xbf16, #tpu.memory_space<vmem>>, %arg6: memref<1x32xf32, #tpu.memory_space<vmem>>, %arg7: memref<32x128xbf16, #tpu.memory_space<vmem>>, %arg8: memref<32x128xbf16, #tpu.memory_space<vmem>>, %arg9: memref<2x128xf32, #tpu.memory_space<vmem>>, %arg10: memref<2x128xf32, #tpu.memory_space<vmem>>, %arg11: memref<2x32xf32, #tpu.memory_space<vmem>>) attributes {dimension_semantics = [#tpu.dimension_semantics<parallel>, #tpu.dimension_semantics<arbitrary>], iteration_bounds = array<i64: 1, 1>, scalar_prefetch = 0 : i64, scratch_operands = 1 : i64, tpu.core_type = #tpu.core_type<tc>, window_params = [{transform_indices = @transform_0, window_bounds = array<i64: 2, 8, 32>}, {transform_indices = @transform_1, window_bounds = array<i64: 2, 32>}, {pipeline_mode = #tpu.pipeline_mode<synchronous>, transform_indices = @transform_2, window_bounds = array<i64: 32, 32>}, {pipeline_mode = #tpu.pipeline_mode<synchronous>, transform_indices = @transform_3, window_bounds = array<i64: 32, 32>}, {pipeline_mode = #tpu.pipeline_mode<synchronous>, transform_indices = @transform_4, window_bounds = array<i64: 1, 32>}, {transform_indices = @transform_5, window_bounds = array<i64: 32, 128>}, {transform_indices = @transform_6, window_bounds = array<i64: 32, 128>}, {transform_indices = @transform_7, window_bounds = array<i64: 2, 128>}, {transform_indices = @transform_8, window_bounds = array<i64: 2, 128>}]} {
    %c0_i32 = arith.constant 0 : i32
    %0 = arith.cmpi eq, %arg1, %c0_i32 : i32
    %1 = arith.extui %0 : i1 to i32
    %c0_i32_0 = arith.constant 0 : i32
    %2 = arith.cmpi ne, %1, %c0_i32_0 : i32
    scf.if %2 {
      %c0_14 = arith.constant 0 : index
      %c0_15 = arith.constant 0 : index
      %c0_16 = arith.constant 0 : index
      %20 = vector.load %arg2[%c0_14, %c0_15, %c0_16] : memref<2x8x32xf32, #tpu.memory_space<vmem>>, vector<2x8x32xf32>
      %c0_17 = arith.constant 0 : index
      %c0_18 = arith.constant 0 : index
      %21 = vector.load %arg3[%c0_17, %c0_18] : memref<2x32xf32, #tpu.memory_space<vmem>>, vector<2x32xf32>
      %22 = vector.shape_cast %20 : vector<2x8x32xf32> to vector<16x32xf32>
      %23 = arith.truncf %22 : vector<16x32xf32> to vector<16x32xbf16>
      %c0_19 = arith.constant 0 : index
      %c0_20 = arith.constant 0 : index
      %24 = vector.load %arg4[%c0_19, %c0_20] : memref<32x32xbf16, #tpu.memory_space<vmem>>, vector<32x32xbf16>
      %cst_21 = arith.constant dense<0.000000e+00> : vector<16x32xf32>
      %25 = tpu.matmul %23, %24, %cst_21 {dimension_numbers = #tpu.dot_dimension_numbers<[1], [0], [0], [1], [0, 0, 1, 1], [], []>} : vector<16x32xbf16>, vector<32x32xbf16>, vector<16x32xf32> -> vector<16x32xf32>
      %26 = arith.truncf %21 : vector<2x32xf32> to vector<2x32xbf16>
      %c0_22 = arith.constant 0 : index
      %c0_23 = arith.constant 0 : index
      %27 = vector.load %arg5[%c0_22, %c0_23] : memref<32x32xbf16, #tpu.memory_space<vmem>>, vector<32x32xbf16>
      %cst_24 = arith.constant dense<0.000000e+00> : vector<2x32xf32>
      %28 = tpu.matmul %26, %27, %cst_24 {dimension_numbers = #tpu.dot_dimension_numbers<[1], [0], [0], [1], [0, 0, 1, 1], [], []>} : vector<2x32xbf16>, vector<32x32xbf16>, vector<2x32xf32> -> vector<2x32xf32>
      %29 = vector.shape_cast %25 : vector<16x32xf32> to vector<2x8x32xf32>
      %30 = vector.shape_cast %28 : vector<2x32xf32> to vector<2x1x32xf32>
      %31 = vector.broadcast %30 : vector<2x1x32xf32> to vector<2x8x32xf32>
      %32 = arith.addf %29, %31 : vector<2x8x32xf32>
      %33 = math.tanh %32 : vector<2x8x32xf32>
      %c0_25 = arith.constant 0 : index
      %c0_26 = arith.constant 0 : index
      %34 = vector.load %arg6[%c0_25, %c0_26] : memref<1x32xf32, #tpu.memory_space<vmem>>, vector<1x32xf32>
      %35 = vector.shape_cast %34 : vector<1x32xf32> to vector<1x1x32xf32>
      %36 = vector.broadcast %35 : vector<1x1x32xf32> to vector<2x8x32xf32>
      %37 = arith.mulf %33, %36 : vector<2x8x32xf32>
      %cst_27 = arith.constant dense<0.000000e+00> : vector<2x8xf32>
      %38 = vector.multi_reduction <add>, %37, %cst_27 [2] : vector<2x8x32xf32> to vector<2x8xf32>
      %39 = vector.shape_cast %38 : vector<2x8xf32> to vector<2x8x1xf32>
      %cst_28 = arith.constant dense<0xFF800000> : vector<2x1xf32>
      %40 = vector.multi_reduction <maximumf>, %39, %cst_28 [1] : vector<2x8x1xf32> to vector<2x1xf32>
      %41 = vector.shape_cast %40 : vector<2x1xf32> to vector<2x1x1xf32>
      %42 = vector.broadcast %41 : vector<2x1x1xf32> to vector<2x8x1xf32>
      %43 = arith.subf %39, %42 : vector<2x8x1xf32>
      %44 = math.exp %43 : vector<2x8x1xf32>
      %cst_29 = arith.constant dense<0.000000e+00> : vector<2x1xf32>
      %45 = vector.multi_reduction <add>, %44, %cst_29 [1] : vector<2x8x1xf32> to vector<2x1xf32>
      %46 = vector.shape_cast %45 : vector<2x1xf32> to vector<2x1x1xf32>
      %47 = vector.broadcast %46 : vector<2x1x1xf32> to vector<2x8x1xf32>
      %48 = arith.divf %44, %47 : vector<2x8x1xf32>
      %49 = vector.broadcast %48 : vector<2x8x1xf32> to vector<2x8x32xf32>
      %50 = arith.mulf %20, %49 : vector<2x8x32xf32>
      %cst_30 = arith.constant dense<0.000000e+00> : vector<2x32xf32>
      %51 = vector.multi_reduction <add>, %50, %cst_30 [1] : vector<2x8x32xf32> to vector<2x32xf32>
      %c0_31 = arith.constant 0 : index
      %c0_32 = arith.constant 0 : index
      %52 = vector.load %arg11[%c0_31, %c0_32] : memref<2x32xf32, #tpu.memory_space<vmem>>, vector<2x32xf32>
      tpu.vector_store %arg11[%c0_31, %c0_32], %51 {strides = array<i32>} : memref<2x32xf32, #tpu.memory_space<vmem>>, vector<2x32xf32>,
    } else {
    }
    %c0 = arith.constant 0 : index
    %c0_1 = arith.constant 0 : index
    %3 = vector.load %arg11[%c0, %c0_1] : memref<2x32xf32, #tpu.memory_space<vmem>>, vector<2x32xf32>
    %4 = arith.truncf %3 : vector<2x32xf32> to vector<2x32xbf16>
    %c0_2 = arith.constant 0 : index
    %c0_3 = arith.constant 0 : index
    %5 = vector.load %arg3[%c0_2, %c0_3] : memref<2x32xf32, #tpu.memory_space<vmem>>, vector<2x32xf32>
    %6 = arith.truncf %5 : vector<2x32xf32> to vector<2x32xbf16>
    %c0_4 = arith.constant 0 : index
    %c0_5 = arith.constant 0 : index
    %7 = vector.load %arg7[%c0_4, %c0_5] : memref<32x128xbf16, #tpu.memory_space<vmem>>, vector<32x128xbf16>
    %cst = arith.constant dense<0.000000e+00> : vector<2x128xf32>
    %8 = tpu.matmul %4, %7, %cst {dimension_numbers = #tpu.dot_dimension_numbers<[1], [0], [0], [1], [0, 0, 1, 1], [], []>} : vector<2x32xbf16>, vector<32x128xbf16>, vector<2x128xf32> -> vector<2x128xf32>
    %c0_6 = arith.constant 0 : index
    %c0_7 = arith.constant 0 : index
    %9 = vector.load %arg8[%c0_6, %c0_7] : memref<32x128xbf16, #tpu.memory_space<vmem>>, vector<32x128xbf16>
    %cst_8 = arith.constant dense<0.000000e+00> : vector<2x128xf32>
    %10 = tpu.matmul %6, %9, %cst_8 {dimension_numbers = #tpu.dot_dimension_numbers<[1], [0], [0], [1], [0, 0, 1, 1], [], []>} : vector<2x32xbf16>, vector<32x128xbf16>, vector<2x128xf32> -> vector<2x128xf32>
    %11 = arith.addf %8, %10 : vector<2x128xf32>
    %c0_9 = arith.constant 0 : index
    %c0_10 = arith.constant 0 : index
    %12 = vector.load %arg9[%c0_9, %c0_10] : memref<2x128xf32, #tpu.memory_space<vmem>>, vector<2x128xf32>
    %13 = arith.addf %11, %12 : vector<2x128xf32>
    %14 = arith.negf %13 : vector<2x128xf32>
    %15 = math.exp %14 : vector<2x128xf32>
    %cst_11 = arith.constant 1.000000e+00 : f32
    %16 = vector.broadcast %cst_11 : f32 to vector<2x128xf32>
    %17 = arith.addf %16, %15 : vector<2x128xf32>
    %18 = arith.divf %16, %17 : vector<2x128xf32>
    %c0_12 = arith.constant 0 : index
    %c0_13 = arith.constant 0 : index
    %19 = vector.load %arg10[%c0_12, %c0_13] : memref<2x128xf32, #tpu.memory_space<vmem>>, vector<2x128xf32>
    tpu.vector_store %arg10[%c0_12, %c0_13], %18 {strides = array<i32>} : memref<2x128xf32, #tpu.memory_space<vmem>>, vector<2x128xf32>,
    return
  }
  func.func @transform_0(%arg0: i32, %arg1: i32) -> (i32, i32, i32) {
    %c0_i32 = arith.constant 0 : i32
    %c0_i32_0 = arith.constant 0 : i32
    %c0_i32_1 = arith.constant 0 : i32
    return %arg0, %c0_i32, %c0_i32_0 : i32, i32, i32
  }
  func.func @transform_1(%arg0: i32, %arg1: i32) -> (i32, i32) {
    %c0_i32 = arith.constant 0 : i32
    %c0_i32_0 = arith.constant 0 : i32
    return %arg0, %c0_i32 : i32, i32
  }
  func.func @transform_2(%arg0: i32, %arg1: i32) -> (i32, i32) {
    %c0_i32 = arith.constant 0 : i32
    %c0_i32_0 = arith.constant 0 : i32
    %c0_i32_1 = arith.constant 0 : i32
    return %c0_i32, %c0_i32_0 : i32, i32
  }
  func.func @transform_3(%arg0: i32, %arg1: i32) -> (i32, i32) {
    %c0_i32 = arith.constant 0 : i32
    %c0_i32_0 = arith.constant 0 : i32
    %c0_i32_1 = arith.constant 0 : i32
    return %c0_i32, %c0_i32_0 : i32, i32
  }
  func.func @transform_4(%arg0: i32, %arg1: i32) -> (i32, i32) {
    %c0_i32 = arith.constant 0 : i32
    %c0_i32_0 = arith.constant 0 : i32
    %c0_i32_1 = arith.constant 0 : i32
    return %c0_i32, %c0_i32_0 : i32, i32
  }
  func.func @transform_5(%arg0: i32, %arg1: i32) -> (i32, i32) {
    %c0_i32 = arith.constant 0 : i32
    %c0_i32_0 = arith.constant 0 : i32
    return %c0_i32, %arg1 : i32, i32
  }
  func.func @transform_6(%arg0: i32, %arg1: i32) -> (i32, i32) {
    %c0_i32 = arith.constant 0 : i32
    %c0_i32_0 = arith.constant 0 : i32
    return %c0_i32, %arg1 : i32, i32
  }
  func.func @transform_7(%arg0: i32, %arg1: i32) -> (i32, i32) {
    %c0_i32 = arith.constant 0 : i32
    return %arg0, %arg1 : i32, i32
  }
  func.func @transform_8(%arg0: i32, %arg1: i32) -> (i32, i32) {
    %c0_i32 = arith.constant 0 : i32
    return %arg0, %arg1 : i32, i32
  }
}

</mosaic_0001>

<bundles_post_ra>
// kernel: tpu_custom_call.1
= control target key start
LH: loop header
LB: loop body
LE: loop exit
PB: predicated region body
PF: predicated region fallthrough
CT: control target
= control target key end

     0   :  { %13 = vsyncpa [#allocation4], 0  ;;  %s905_s0 = inlined_call_operand.hbm [shape: f32[2,8,32], index: 0, kind: input, shape index: {}]   ;;  %s906_s1 = inlined_call_operand.vmem [shape: f32[2,32], index: 1, kind: input, shape index: {}]   ;;  %s907_s2 = inlined_call_operand.hbm [shape: bf16[32,32], index: 2, kind: input, shape index: {}]   ;;  %s908_s3 = inlined_call_operand.hbm [shape: bf16[32,32], index: 3, kind: input, shape index: {}]   ;;  %s909_s4 = inlined_call_operand.hbm [shape: f32[1,32], index: 4, kind: input, shape index: {}]   ;;  %s910_s5 = inlined_call_operand.vmem [shape: bf16[32,128], index: 5, kind: input, shape index: {}]   ;;  %s911_s6 = inlined_call_operand.hbm [shape: bf16[32,128], index: 6, kind: input, shape index: {}]   ;;  %s912_s7 = inlined_call_operand.vmem [shape: f32[2,128], index: 7, kind: input, shape index: {}]   ;;  %s913_s8 = inlined_call_operand.hbm [shape: f32[2,128], index: 8, kind: output, shape index: {}]  }
   0x1   :  { %14 = vsyncpa [#allocation7], 0 }
   0x2   :  { %15 = vsyncpa [#allocation10], 0 }
   0x3   :  { %16 = vsyncpa [#allocation5], 0  ;;  %s719_s27 = smov [#allocation6]   ;;  %s579_s9 = scalar_lea.hbm %s907_s2, 256 }
   0x4   :  { %s36_s28 = sshll.u32 %s719_s27, 4  ;;  %p580_p0 = scmp.ne.s32.totalorder %s907_s2, %s579_s9  ;;  %s37_s28 = int_to_ptr.vmem [resolvable:$true] %s36_s28 }
   0x5   :  { %p583_p1 = scmp.lt.u32.totalorder %s579_s9, %s907_s2 }
   0x7   :  { %p585_p2 = pnand %p583_p1, %p580_p0 }
   0x9   :  { %588 = shalt.err (!%p585_p2)
}
   0xa   :  { %s589_s14 = scalar_lea.vmem %s37_s28, 256  ;;  %p594_p4 = scmp.lt.s32.totalorder %s37_s28, %s37_s28 }
   0xb   :  { %p590_p3 = scmp.ne.s32.totalorder %s37_s28, %s589_s14  ;;  %p595_p5 = scmp.lt.s32.totalorder %s589_s14, %s589_s14 }
   0xd   :  { %p596_p6 = por %p595_p5, %p594_p4 }
   0xf   :  { %p597_p7 = pnand %p596_p6, %p590_p3 }
  0x11   :  { %600 = shalt.err (!%p597_p7)
}
  0x12   :  { %s720_s15 = smov 64   ;;  %s721_s16 = smov 4  }
  0x13   :  { %42 = dma.hbm_to_vmem [thread:$0]  %s907_s2, 256, %s37_s28, [#allocation7], %s720_s15, %s720_s15, %s721_s16  }
  0x14   :  { %s722_s19 = smov [#allocation9]   ;;  %s723_s21 = smov [#allocation3]  }
  0x15   :  { %s61_s20 = sshll.u32 %s722_s19, 4  ;;  %s22_s22 = sshll.u32 %s723_s21, 4  ;;  %s62_s20 = int_to_ptr.vmem [resolvable:$true] %s61_s20  ;;  %s23_s22 = int_to_ptr.vmem [resolvable:$true] %s22_s22 }
  0x16   :  { %s601_s25 = scalar_lea.hbm %s909_s4, 16 }
  0x17   :  { %p602_p8 = scmp.ne.s32.totalorder %s909_s4, %s601_s25  ;;  %p605_p9 = scmp.lt.u32.totalorder %s601_s25, %s909_s4 }
  0x19   :  { %p607_p10 = pnand %p605_p9, %p602_p8 }
  0x1b   :  { %610 = shalt.err (!%p607_p10)
}
  0x1c   :  { %s611_s2 = scalar_lea.vmem %s62_s20, 16  ;;  %s615_s28 = scalar_lea.vmem %s62_s20, 32 }
  0x1d   :  { %p612_p11 = scmp.ne.s32.totalorder %s62_s20, %s611_s2  ;;  %p616_p12 = scmp.lt.s32.totalorder %s62_s20, %s62_s20 }
  0x1e   :  { %p617_p13 = scmp.lt.s32.totalorder %s615_s28, %s611_s2 }
  0x20   :  { %p618_p0 = por %p617_p13, %p616_p12 }
  0x22   :  { %p619_p1 = pnand %p618_p0, %p612_p11 }
  0x24   :  { %622 = shalt.err (!%p619_p1)
}
  0x25   :  { %64 = dma.hbm_to_vmem [thread:$0]  %s909_s4, 16, %s62_s20, [#allocation10]  }
  0x26   :  { %s623_s13 = scalar_lea.hbm %s905_s0, 256 }
  0x27   :  { %p624_p2 = scmp.ne.s32.totalorder %s905_s0, %s623_s13  ;;  %p627_p3 = scmp.lt.u32.totalorder %s623_s13, %s905_s0 }
  0x29   :  { %p629_p4 = pnand %p627_p3, %p624_p2 }
  0x2b   :  { %632 = shalt.err (!%p629_p4)
}
  0x2c   :  { %s633_s21 = scalar_lea.vmem %s23_s22, 256  ;;  %p638_p6 = scmp.lt.s32.totalorder %s23_s22, %s23_s22 }
  0x2d   :  { %p634_p5 = scmp.ne.s32.totalorder %s23_s22, %s633_s21  ;;  %p639_p7 = scmp.lt.s32.totalorder %s633_s21, %s633_s21 }
  0x2f   :  { %p640_p8 = por %p639_p7, %p638_p6 }
  0x31   :  { %p641_p9 = pnand %p640_p8, %p634_p5 }
  0x33   :  { %644 = shalt.err (!%p641_p9)
}
  0x34   :  { %s724_s4 = smov 128   ;;  %s725_s20 = smov 8  }
  0x35   :  { %28 = dma.hbm_to_vmem [thread:$0]  %s905_s0, 256, %s23_s22, [#allocation4], %s724_s4, %s724_s4, %s725_s20  }
  0x36   :  { %s726_s25 = smov [#allocation8]   ;;  %s727_s27 = smov [#allocation11]  }
  0x37   :  { %s48_s26 = sshll.u32 %s726_s25, 4  ;;  %s72_s29 = sshll.u32 %s727_s27, 4  ;;  %s49_s26 = int_to_ptr.vmem [resolvable:$true] %s48_s26  ;;  %s73_s29 = int_to_ptr.vmem [resolvable:$true] %s72_s29 }
  0x38   :  { %s645_s28 = scalar_lea.hbm %s908_s3, 256 }
  0x39   :  { %p646_p10 = scmp.ne.s32.totalorder %s908_s3, %s645_s28  ;;  %p649_p11 = scmp.lt.u32.totalorder %s645_s28, %s908_s3 }
  0x3b   :  { %p651_p12 = pnand %p649_p11, %p646_p10 }
  0x3d   :  { %654 = shalt.err (!%p651_p12)
}
  0x3e   :  { %s655_s0 = scalar_lea.vmem %s49_s26, 256  ;;  %p660_p0 = scmp.lt.s32.totalorder %s49_s26, %s49_s26 }
  0x3f   :  { %p656_p13 = scmp.ne.s32.totalorder %s49_s26, %s655_s0  ;;  %p661_p1 = scmp.lt.s32.totalorder %s655_s0, %s655_s0 }
  0x41   :  { %p662_p2 = por %p661_p1, %p660_p0 }
  0x43   :  { %p663_p3 = pnand %p662_p2, %p656_p13 }
  0x45   :  { %666 = shalt.err (!%p663_p3)
}
  0x46   :  { %54 = dma.hbm_to_vmem [thread:$0]  %s908_s3, 256, %s49_s26, [#allocation7], %s720_s15, %s720_s15, %s721_s16  }
  0x47   :  { %s667_s18 = scalar_lea.hbm %s911_s6, 256 }
  0x48   :  { %p668_p4 = scmp.ne.s32.totalorder %s911_s6, %s667_s18  ;;  %p671_p5 = scmp.lt.u32.totalorder %s667_s18, %s911_s6 }
  0x4a   :  { %p673_p6 = pnand %p671_p5, %p668_p4 }
  0x4c   :  { %676 = shalt.err (!%p673_p6)
}
  0x4d   :  { %s677_s23 = scalar_lea.vmem %s73_s29, 256  ;;  %p682_p8 = scmp.lt.s32.totalorder %s73_s29, %s73_s29 }
  0x4e   :  { %p678_p7 = scmp.ne.s32.totalorder %s73_s29, %s677_s23  ;;  %p683_p9 = scmp.lt.s32.totalorder %s677_s23, %s677_s23 }
  0x50   :  { %p684_p10 = por %p683_p9, %p682_p8 }
  0x52   :  { %p685_p11 = pnand %p684_p10, %p678_p7 }
  0x54   :  { %688 = shalt.err (!%p685_p11)
}
  0x55   :  { %78 = dma.hbm_to_vmem [thread:$0]  %s911_s6, 256, %s73_s29, [#allocation10], %s720_s15, %s720_s15, %s721_s16  }
  0x56   :  { %711 = dma.done.wait [#allocation4], 256  }
  0x57   :  { %712 = vsyncadd [#allocation4], 4294967040 }
  0x58   :  { %713 = dma.done.wait [#allocation7], 512  }
  0x59   :  { %714 = vsyncadd [#allocation7], 4294966784 }
  0x5a   :  { %715 = dma.done.wait [#allocation10], 272  }
  0x5b   :  { %716 = vsyncadd [#allocation10], 4294967024  ;;  %v728_v0 = vmov 0.0   ;;  %vm729_vm0 = vmmov 0   ;;  %v555_v1 = vld [vmem:[#allocation8] sm:$0xff]   ;;  %v556_v2 = vld [vmem:[#allocation6] sm:$0xff]   ;;  %v230_v12 = vlaneseq }
  0x5c   :  { %518 = vmatprep.subr.bf16.mxu1 %v728_v0  ;;  %510 = vmatprep.subr.bf16.mxu0 %v728_v0  ;;  %v557_v3 = vld [vmem:[#allocation8 + $0x8] sm:$0xff]   ;;  %v558_v4 = vld [vmem:[#allocation6 + $0x8] sm:$0xff]   ;;  %vm121_vm1 = vcmask 261120   ;;  %v857_v6 = vld [vmem:[#allocation3] sm:$0xff]  ;;  %v730_v10 = vmov 1966171168  }
  0x5d   :  { %522 = vmatprep.mubr.msk.bf16.mxu1 %vm729_vm0, %v728_v0  ;;  %514 = vmatprep.mubr.msk.bf16.mxu0 %vm729_vm0, %v728_v0  ;;  %v103_v5 = vld [vmem:[%s906_s1] sm:$0x3]  ;;  %v859_v7 = vld [vmem:[#allocation3 + $0x8] sm:$0xff]  ;;  %v228_v11 = vunpack.c.l.s4 %v730_v10  ;;  %v231_v14 = vshrl.u32 %v230_v12, 7  ;;  %v490_v33 = vld [vmem:[#allocation9] ss:$0 sm:$0xff] }
  0x5e   :  { %519 = vmatpush3.bf16.msra.mxu1 %v555_v1  ;;  %511 = vmatpush3.bf16.msra.mxu0 %v556_v2  ;;  %v166_v8 = vpack.c.bf16 %v103_v5, %v103_v5  ;;  %v104_v9 = vpack.c.bf16 %v859_v7, %v857_v6  ;;  %v559_v40 = vld [vmem:[#allocation11] sm:$0xff]   ;;  %v560_v41 = vld [vmem:[%s910_s5] sm:$0xff]   ;;  %v562_v44 = vld [vmem:[%s910_s5 + $0x8] sm:$0xff]   ;;  %vm330_vm2 = vcmask 1041409   ;;  %vm333_vm3 = vcmask 254976   ;;  %s731_s2 = smov [#allocation12]  }
  0x5f   :  { %520 = vmatprep.subr.bf16.mxu1 %v728_v0  ;;  %512 = vmatprep.subr.bf16.mxu0 %v728_v0  ;;  %v229_v13 = vunpack.c.0.s8 %v228_v11  ;;  %v251_v20 = vsub.s32 0, %v231_v14  ;;  %v561_v42 = vld [vmem:[#allocation11 + $0x8] sm:$0xff]   ;;  %s473_s28 = sshll.u32 %s731_s2, 4  ;;  %s474_s28 = int_to_ptr.vmem [resolvable:$true] %s473_s28 }
  0x60   :  { %v337_v43 = vld [vmem:[%s906_s1] sm:$0x3]  ;;  %s689_s9 = scalar_lea.vmem %s474_s28, 32  ;;  %p694_p13 = scmp.lt.s32.totalorder %s474_s28, %s474_s28 }
  0x61   :  { %v232_v15 = vsub.s32 %v229_v13, %v231_v14  ;;  %v338_v45 = vpack.c.bf16 %v337_v43, %v337_v43  ;;  %p690_p12 = scmp.ne.s32.totalorder %s474_s28, %s689_s9  ;;  %p695_p0 = scmp.lt.s32.totalorder %s689_s9, %s689_s9 }
  0x62   :  { %521 = vmatpush3.bf16.msra.mxu1 %v557_v3  ;;  %513 = vmatpush3.bf16.msra.mxu0 %v558_v4 }
  0x63   :  { %534 = vmatprep.subr.bf16.mxu1 %v728_v0  ;;  %526 = vmatprep.subr.bf16.mxu0 %v728_v0  ;;  %p696_p1 = por %p695_p0, %p694_p13 }
  0x65   :  { %523 = vmatmul.mubr.msk.bf16.vlgmr.msra.gmra.mrb[0].mxu1 %vm121_vm1, %v166_v8  ;;  %515 = vmatmul.mubr.msk.bf16.vlgmr.msra.gmra.mrb[0].mxu0 %vm121_vm1, %v104_v9  ;;  %p697_p2 = pnand %p696_p1, %p690_p12 }
  0x66   :  { %538 = vmatprep.mubr.msk.bf16.mxu1 %vm729_vm0, %v728_v0  ;;  %530 = vmatprep.mubr.msk.bf16.mxu0 %vm729_vm0, %v728_v0 }
  0x67   :  { %527 = vmatpush3.bf16.msra.mxu0 %v559_v40  ;;  %535 = vmatpush3.bf16.msra.mxu1 %v560_v41 }
  0x68   :  { %528 = vmatprep.subr.bf16.mxu0 %v728_v0  ;;  %536 = vmatprep.subr.bf16.mxu1 %v728_v0 }
  0x6b   :  { %529 = vmatpush3.bf16.msra.mxu0 %v561_v42  ;;  %537 = vmatpush3.bf16.msra.mxu1 %v562_v44  ;;  %v458_v42 = vld [vmem:[%s912_s7] sm:$0x3] }
  0x6e   :  { %531 = vmatmul.mubr.msk.bf16.vlgmr.msra.gmra.mrb[4].mxu0 %vm121_vm1, %v338_v45 }
 0x138   :  { %v220_v16 = vpop.f32.mrb[0].mxu1  ;;  %v159_v19 = vpop.f32.mrb[0].mxu0 }
 0x139   :  { %v233_v17 = vrot.slane %v220_v16, %v232_v15  ;;  %v524_v18 = vpop.f32.mrb[1].mxu1  ;;  %v516_v22 = vpop.f32.mrb[1].mxu0 }
 0x13a   :  { %v223_v21 = vpop.f32.mrb[2].mxu1  ;;  %v162_v26 = vpop.f32.mrb[2].mxu0 }
 0x13b   :  { %v234_v23 = vcombine.high %v233_v17, %v233_v17  ;;  %v241_v24 = vrot.slane %v233_v17, %v232_v15  ;;  %v525_v25 = vpop.f32.mrb[3].mxu1  ;;  %v517_v27 = vpop.f32.mrb[3].mxu0 }
 0x13d   :  { %v252_v28 = vrot.slane %v241_v24, %v251_v20  ;;  %v248_v29 = vrot.slane %v234_v23, %v232_v15 }
 0x13f   :  { %v259_v30 = vadd.f32 %v252_v28, %v159_v19  ;;  %v256_v31 = vrot.slane %v248_v29, %v251_v20 }
 0x141   :  { %563 = vtanh.f32 %v259_v30  ;;  %v260_v32 = vadd.f32 %v256_v31, %v162_v26 }
 0x143   :  { %565 = vtanh.f32 %v260_v32 }
 0x14b   :  { %v564_v34 = vpop.eup %563 }
 0x14c   :  { %v270_v35 = vmul.f32 %v564_v34, %v490_v33 }
 0x14d   :  { %v566_v36 = vpop.eup %565 }
 0x14e   :  { %v272_v37 = vsel %vm121_vm1, %v270_v35, 0.0  ;;  %v271_v38 = vmul.f32 %v566_v36, %v490_v33 }
 0x14f   :  { %273 = vadd.xlane.f32.xlu0 %v272_v37 }
 0x150   :  { %v275_v39 = vsel %vm121_vm1, %v271_v38, 0.0 }
 0x153   :  { %276 = vadd.xlane.f32.xlu0 %v275_v39 }
 0x1dc   :  { %v274_v46 = vpop.xlane.xlu0 %273 }
 0x1dd   :  { %v278_v47 = vrot.slane %v274_v46, 4 }
 0x1df   :  { %v279_v48 = vmax.f32 %v274_v46, %v278_v47 }
 0x1e0   :  { %v277_v49 = vpop.xlane.xlu0 %276 }
 0x1e1   :  { %v280_v50 = vrot.slane %v279_v48, 2  ;;  %v284_v51 = vrot.slane %v277_v49, 4 }
 0x1e3   :  { %v281_v52 = vmax.f32 %v279_v48, %v280_v50  ;;  %v285_v53 = vmax.f32 %v277_v49, %v284_v51 }
 0x1e5   :  { %v282_v54 = vrot.slane %v281_v52, 1  ;;  %v286_v55 = vrot.slane %v285_v53, 2 }
 0x1e7   :  { %v283_v56 = vmax.f32 %v281_v52, %v282_v54  ;;  %v287_v57 = vmax.f32 %v285_v53, %v286_v55 }
 0x1e9   :  { %v290_v58 = vsub.f32 %v274_v46, %v283_v56  ;;  %v288_v59 = vrot.slane %v287_v57, 1 }
 0x1eb   :  { %v292_v60 = vmul.f32 1.442695, %v290_v58  ;;  %v289_v61 = vmax.f32 %v287_v57, %v288_v59 }
 0x1ed   :  { %567 = vpow2.f32 %v292_v60  ;;  %v291_v62 = vsub.f32 %v277_v49, %v289_v61 }
 0x1ef   :  { %v294_v63 = vmul.f32 1.442695, %v291_v62 }
 0x1f1   :  { %569 = vpow2.f32 %v294_v63 }
 0x1f7   :  { %v568_v0 = vpop.eup %567 }
 0x1f8   :  { %v296_v1 = vrot.slane %v568_v0, 4 }
 0x1fa   :  { %v297_v2 = vadd.f32 %v568_v0, %v296_v1 }
 0x1fb   :  { %v570_v3 = vpop.eup %569 }
 0x1fc   :  { %v298_v4 = vrot.slane %v297_v2, 2  ;;  %v302_v5 = vrot.slane %v570_v3, 4 }
 0x1fe   :  { %v299_v8 = vadd.f32 %v298_v4, %v297_v2  ;;  %v303_v9 = vadd.f32 %v570_v3, %v302_v5 }
 0x200   :  { %v300_v10 = vrot.slane %v299_v8, 1  ;;  %v304_v11 = vrot.slane %v303_v9, 2 }
 0x202   :  { %v301_v12 = vadd.f32 %v300_v10, %v299_v8  ;;  %v305_v13 = vadd.f32 %v304_v11, %v303_v9 }
 0x204   :  { %571 = vrcp.f32 %v301_v12  ;;  %v306_v14 = vrot.slane %v305_v13, 1 }
 0x206   :  { %v307_v15 = vadd.f32 %v306_v14, %v305_v13 }
 0x208   :  { %573 = vrcp.f32 %v307_v15 }
 0x20e   :  { %v572_v16 = vpop.eup %571 }
 0x20f   :  { %v309_v17 = vmul.f32 %v572_v16, %v568_v0 }
 0x211   :  { %v312_v18 = vmul.f32 %v309_v17, %v857_v6 }
 0x212   :  { %v574_v19 = vpop.eup %573 }
 0x213   :  { %v314_v20 = vsel %vm121_vm1, %v312_v18, 0.0  ;;  %v311_v21 = vmul.f32 %v574_v19, %v570_v3 }
 0x214   :  { %v315_v22 = vrot.slane %v314_v20, 4 }
 0x215   :  { %v313_v23 = vmul.f32 %v311_v21, %v859_v7  ;;  %v397_v7 = vpop.f32.mrb[4].mxu0 }
 0x216   :  { %v316_v24 = vadd.f32 %v315_v22, %v314_v20  ;;  %v532_v38 = vpop.f32.mrb[5].mxu0 }
 0x217   :  { %v321_v25 = vsel %vm121_vm1, %v313_v23, 0.0  ;;  %v400_v39 = vpop.f32.mrb[6].mxu0 }
 0x218   :  { %v317_v26 = vrot.slane %v316_v24, 2  ;;  %v322_v27 = vrot.slane %v321_v25, 4  ;;  %v533_v40 = vpop.f32.mrb[7].mxu0 }
 0x21a   :  { %v318_v28 = vadd.f32 %v317_v26, %v316_v24  ;;  %v323_v29 = vadd.f32 %v322_v27, %v321_v25 }
 0x21c   :  { %v324_v30 = vrot.slane %v323_v29, 2  ;;  %v319_v31 = vrot.slane %v318_v28, 1 }
 0x21e   :  { %v325_v32 = vadd.f32 %v324_v30, %v323_v29  ;;  %v320_v6 = vadd.f32 %v319_v31, %v318_v28 }
 0x220   :  { %v326_v33 = vrot.slane %v325_v32, 1 }
 0x222   :  { %v327_v34 = vadd.f32 %v326_v33, %v325_v32 }
 0x224   :  { %v331_v35 = vsel %vm330_vm2, %v327_v34, %v320_v6 }
 0x225   :  { %334 = vst.msk [vmem:[#allocation2] sm:$0x3] %vm333_vm3, %v331_v35 }
 0x22c   :  { %v335_v36 = vld [vmem:[#allocation2] sm:$0x3] }
 0x22d   :  { %v336_v37 = vpack.c.bf16 %v335_v36, %v335_v36 }
 0x22f   :  { %539 = vmatmul.mubr.msk.bf16.vlgmr.msra.gmra.mrb[4].mxu1 %vm121_vm1, %v336_v37 }
 0x302   :  { %v452_v41 = vpop.f32.mrb[4].mxu1 }
 0x303   :  { %v453_v43 = vadd.f32 %v452_v41, %v397_v7  ;;  %v540_v44 = vpop.f32.mrb[5].mxu1 }
 0x304   :  { %v455_v45 = vpop.f32.mrb[6].mxu1 }
 0x305   :  { %v459_v46 = vadd.f32 %v458_v42, %v453_v43  ;;  %v541_v47 = vpop.f32.mrb[7].mxu1 }
 0x307   :  { %v497_v48 = vmul.f32 -1.442695, %v459_v46 }
 0x309   :  { %575 = vpow2.f32 %v497_v48 }
 0x313   :  { %v576_v49 = vpop.eup %575 }
 0x314   :  { %v463_v50 = vadd.f32 1.0, %v576_v49 }
 0x316   :  { %577 = vrcp.f32 %v463_v50 }
 0x320   :  { %v578_v51 = vpop.eup %577 }
 0x321   :  { %466 = vst [vmem:[#allocation12] sm:$0x3] %v578_v51 }
 0x322   :  { %700 = shalt.err (!%p697_p2)
}
 0x323   :  { %s701_s11 = scalar_lea.hbm %s913_s8, 32 }
 0x324   :  { %p702_p3 = scmp.ne.s32.totalorder %s913_s8, %s701_s11  ;;  %p705_p4 = scmp.lt.u32.totalorder %s701_s11, %s913_s8 }
 0x326   :  { %p707_p5 = pnand %p705_p4, %p702_p3 }
 0x328   :  { %710 = shalt.err (!%p707_p5)
}
 0x329   :  { %476 = dma.vmem_to_hbm [thread:$0]  %s474_s28, 32, %s913_s8, [#allocation5]  }
 0x32a   :  { %717 = dma.done.wait [#allocation5], 32  }
 0x32b   :  { %718 = vsyncadd [#allocation5], 4294967264 }
 0x32c   :  { %480 = vsyncpa [#allocation4], 1 }
 0x32d   :  { %481 = vsyncpa [#allocation7], 1 }
 0x32e   :  { %482 = vsyncpa [#allocation10], 1 }
 0x32f   :  { %483 = vsyncpa [#allocation5], 1 }

</bundles_post_ra>
